<compile_context>
chip_gen: v5e
topology: v5e:2x2
jax: 0.10.0
libtpu: 0.0.40
codegen_flags: <defaults>
</compile_context>

<pallas_src>
import functools
import math

import jax
import jax.numpy as jnp
from jax.experimental import pallas as pl
from jax.experimental.pallas import tpu as pltpu


def _cdiv(a: int, b: int) -> int:
    return -(-a // b)


def _target_block_bytes() -> int:
    """Per-block HBM byte target, generation aware.

    v6e/v7x: 32 MiB scoped-VMEM default -> 4 MiB blocks (2x double-buffered
    input + output = 16 MiB live) fit comfortably.
    v5e: 16 MiB scoped-VMEM default -> stay at 2 MiB blocks.
    """
    try:
        kind = jax.devices()[0].device_kind.lower()
    except Exception:
        return 2 << 20
    if "v5" in kind:
        return 2 << 20
    return 4 << 20


def _compiler_params(semantics, live_bytes_est: int) -> pltpu.CompilerParams:
    # Only raise the scoped-VMEM limit when the most conservative default
    # (16 MiB on v5e) would not hold double-buffered blocks + f32 temporaries.
    vmem_limit = None
    if live_bytes_est > (12 << 20):
        # Cap below v7x's 64 MiB *physical* VMEM.
        vmem_limit = min(int(live_bytes_est) + (8 << 20), 60 << 20)
    return pltpu.CompilerParams(
        dimension_semantics=semantics, vmem_limit_bytes=vmem_limit
    )


def _pixelnorm_kernel(x_ref, o_ref, *, eps: float, dim_size: int):
    """Normalize over axis=1 of the block; all other axes are independent.

    Works for both the mid path (block = (lead_tile, d, lane_tile)) and the
    last-axis path (block = (row_tile, d)).
    """
    # f32 accumulation for the sum of squares; don't keep this copy live
    # through the scaling multiply (x_ref is re-read below).
    xf = x_ref[...].astype(jnp.float32)
    sumsq = jnp.sum(xf * xf, axis=1, keepdims=True)
    denom = jnp.maximum(jnp.sqrt(sumsq), jnp.float32(eps))  # F.normalize clamp
    # Approx reciprocal on the (otherwise idle) EUP slot + one Newton step to
    # recover ~f32 accuracy; keeps the VALU slot clear.
    inv = pl.reciprocal(denom, approx=True)
    inv = inv * (jnp.float32(2.0) - denom * inv)
    scale = jnp.float32(math.sqrt(float(dim_size)))
    o_ref[...] = (x_ref[...].astype(jnp.float32) * (scale * inv)).astype(o_ref.dtype)


def _pixelnorm_mid(x3: jax.Array, eps: float) -> jax.Array:
    """x3: (lead, D, trail) -- normalize over the middle axis (sublanes)."""
    lead, d, trail = x3.shape
    itemsize = x3.dtype.itemsize
    target = _target_block_bytes()

    # Lane tile: full trail if a single lead row fits the byte target,
    # otherwise the largest 128-multiple that does.
    max_lanes = max(128, (target // (itemsize * d)) // 128 * 128)
    lane_tile = trail if trail <= max_lanes else max_lanes

    # Lead tile: block several lead elements so small-trail shapes still get
    # ~target-sized blocks (the review's biggest win).
    per_lead_bytes = d * lane_tile * itemsize
    lead_tile = int(min(lead, max(1, target // per_lead_bytes)))

    # Megacore / v7x balance: keep several parallel grid steps so both
    # TensorCores get work, as long as blocks stay >= ~1 MiB.
    lane_steps = _cdiv(trail, lane_tile)
    while (_cdiv(lead, lead_tile) * lane_steps < 8
           and lead_tile > 1
           and lead_tile * per_lead_bytes >= (1 << 20)):
        lead_tile = max(1, lead_tile // 2)

    block_elems = lead_tile * d * lane_tile
    # 2x double-buffered input + output blocks (input dtype) + f32 temporaries.
    live_est = 4 * block_elems * itemsize + 2 * block_elems * 4

    # NOTE(perf cliff): if trail < 128 (or not a multiple of 128) the output's
    # last dim is narrow, so every store is a masked vst.msk and runs below
    # HBM roofline.  Avoiding that would need a relayout/transpose which we
    # deliberately skip to keep the wrapper copy-free.

    kernel = functools.partial(_pixelnorm_kernel, eps=eps, dim_size=d)
    return pl.pallas_call(
        kernel,
        out_shape=jax.ShapeDtypeStruct(x3.shape, x3.dtype),
        grid_spec=pltpu.PrefetchScalarGridSpec(
            num_scalar_prefetch=0,
            grid=(_cdiv(lead, lead_tile), lane_steps),
            in_specs=[pl.BlockSpec((lead_tile, d, lane_tile),
                                   lambda n, s: (n, 0, s))],
            out_specs=pl.BlockSpec((lead_tile, d, lane_tile),
                                   lambda n, s: (n, 0, s)),
        ),
        compiler_params=_compiler_params(("parallel", "parallel"), live_est),
        cost_estimate=pl.CostEstimate(
            flops=3 * int(x3.size),
            transcendentals=2 * lead * trail,
            bytes_accessed=2 * int(x3.size) * itemsize,
        ),
    )(x3)


def _pixelnorm_last(x2: jax.Array, eps: float) -> jax.Array:
    """x2: (rows, D) -- normalize each row over the last axis (lanes)."""
    rows, d = x2.shape
    itemsize = x2.dtype.itemsize
    target = _target_block_bytes()

    max_rows = max(8, (target // (itemsize * d)) // 8 * 8)
    row_tile = rows if rows <= max_rows else max_rows

    # Megacore / v7x balance (only while blocks stay >= ~1 MiB).
    per_row_bytes = d * itemsize
    while (_cdiv(rows, row_tile) < 8
           and row_tile > 8
           and row_tile * per_row_bytes >= (1 << 20)):
        row_tile = max(8, (row_tile // 2 + 7) // 8 * 8)

    block_elems = row_tile * d
    live_est = 4 * block_elems * itemsize + 2 * block_elems * 4

    # NOTE(perf cliff): if d < 128 (or not a multiple of 128) stores here are
    # masked vst.msk and run below HBM roofline.

    kernel = functools.partial(_pixelnorm_kernel, eps=eps, dim_size=d)
    return pl.pallas_call(
        kernel,
        out_shape=jax.ShapeDtypeStruct(x2.shape, x2.dtype),
        grid_spec=pltpu.PrefetchScalarGridSpec(
            num_scalar_prefetch=0,
            grid=(_cdiv(rows, row_tile),),
            in_specs=[pl.BlockSpec((row_tile, d), lambda i: (i, 0))],
            out_specs=pl.BlockSpec((row_tile, d), lambda i: (i, 0)),
        ),
        compiler_params=_compiler_params(("parallel",), live_est),
        cost_estimate=pl.CostEstimate(
            flops=3 * int(x2.size),
            transcendentals=2 * rows,
            bytes_accessed=2 * int(x2.size) * itemsize,
        ),
    )(x2)


def pixel_norm(x: jax.Array, dim: int = 1, eps: float = 1e-4) -> jax.Array:
    """PixelNorm forward. Default dim=1 = channel axis of NCHW.

    Matches PyTorch: F.normalize(x, dim=dim, eps=eps) * sqrt(x.shape[dim]).
    """
    ndim = x.ndim
    dim = dim % ndim
    d = x.shape[dim]
    lead = math.prod(x.shape[:dim])
    trail = math.prod(x.shape[dim + 1:])

    if trail > 1:
        # Interior axis (e.g. channels of NCHW): free reshape to
        # (lead, D, trail); channel reduction is a sublane (XLU) reduce and
        # spatial positions sit on lanes.
        out = _pixelnorm_mid(x.reshape(lead, d, trail), eps)
    else:
        # `dim` is (effectively) the last axis: (rows, D), reduce over lanes.
        out = _pixelnorm_last(x.reshape(lead, d), eps)
    return out.reshape(x.shape)


def _pixel_norm_ref(x, dim=1, eps=1e-4):
    # pure-JAX reference of F.normalize(x, dim) * sqrt(x.shape[dim])
    xf = x.astype(jnp.float32)
    norm = jnp.sqrt(jnp.sum(xf * xf, axis=dim, keepdims=True))
    denom = jnp.maximum(norm, eps)
    return (xf / denom * math.sqrt(float(x.shape[dim]))).astype(x.dtype)


if __name__ == "__main__":
    key = jax.random.PRNGKey(0)
    N, C, H, W = 2, 4, 16, 16
    x = jax.random.normal(key, (N, C, H, W), dtype=jnp.float32)

    out = jax.block_until_ready(pixel_norm(x, dim=1, eps=1e-4))
    ref = _pixel_norm_ref(x, dim=1, eps=1e-4)
    assert out.shape == x.shape and out.dtype == x.dtype
    assert jnp.allclose(out, ref, atol=1e-5, rtol=1e-5), "mismatch vs reference (dim=1)"

    # also exercise the last-axis path
    x2 = jax.random.normal(jax.random.PRNGKey(1), (2, 8, 32), dtype=jnp.float32)
    out2 = jax.block_until_ready(pixel_norm(x2, dim=-1, eps=1e-4))
    ref2 = _pixel_norm_ref(x2, dim=-1, eps=1e-4)
    assert jnp.allclose(out2, ref2, atol=1e-5, rtol=1e-5), "mismatch vs reference (last dim)"

    # bf16 path (dtype-aware tiling) on a small-spatial, many-channel shape
    x3 = jax.random.normal(jax.random.PRNGKey(2), (2, 64, 4, 4), dtype=jnp.bfloat16)
    out3 = jax.block_until_ready(pixel_norm(x3, dim=1, eps=1e-4))
    ref3 = _pixel_norm_ref(x3, dim=1, eps=1e-4)
    assert jnp.allclose(out3.astype(jnp.float32), ref3.astype(jnp.float32),
                        atol=2e-2, rtol=2e-2), "mismatch vs reference (bf16)"

    print("KERNEL_OK")
</pallas_src>

<mosaic_0001>
module attributes {stable_mosaic.version = 11 : i64} {
  func.func @_pixelnorm_kernel(%arg0: i32, %arg1: i32, %arg2: memref<2x4x256xf32, #tpu.memory_space<vmem>>, %arg3: memref<2x4x256xf32, #tpu.memory_space<vmem>>) attributes {dimension_semantics = [#tpu.dimension_semantics<parallel>, #tpu.dimension_semantics<parallel>], iteration_bounds = array<i64: 1, 1>, scalar_prefetch = 0 : i64, scratch_operands = 0 : i64, tpu.core_type = #tpu.core_type<tc>, window_params = [{transform_indices = @transform_0, window_bounds = array<i64: 2, 4, 256>}, {transform_indices = @transform_1, window_bounds = array<i64: 2, 4, 256>}]} {
    %c0 = arith.constant 0 : index
    %c0_0 = arith.constant 0 : index
    %c0_1 = arith.constant 0 : index
    %0 = vector.load %arg2[%c0, %c0_0, %c0_1] : memref<2x4x256xf32, #tpu.memory_space<vmem>>, vector<2x4x256xf32>
    %1 = arith.mulf %0, %0 : vector<2x4x256xf32>
    %cst = arith.constant dense<0.000000e+00> : vector<2x256xf32>
    %2 = vector.multi_reduction <add>, %1, %cst [1] : vector<2x4x256xf32> to vector<2x256xf32>
    %3 = vector.shape_cast %2 : vector<2x256xf32> to vector<2x1x256xf32>
    %4 = math.sqrt %3 : vector<2x1x256xf32>
    %cst_2 = arith.constant 9.99999974E-5 : f32
    %5 = vector.broadcast %cst_2 : f32 to vector<2x1x256xf32>
    %6 = arith.maximumf %4, %5 : vector<2x1x256xf32>
    %7 = tpu.reciprocal %6 {approx = true} : vector<2x1x256xf32> -> vector<2x1x256xf32>
    %8 = arith.mulf %6, %7 : vector<2x1x256xf32>
    %cst_3 = arith.constant 2.000000e+00 : f32
    %9 = vector.broadcast %cst_3 : f32 to vector<2x1x256xf32>
    %10 = arith.subf %9, %8 : vector<2x1x256xf32>
    %11 = arith.mulf %7, %10 : vector<2x1x256xf32>
    %c0_4 = arith.constant 0 : index
    %c0_5 = arith.constant 0 : index
    %c0_6 = arith.constant 0 : index
    %12 = vector.load %arg2[%c0_4, %c0_5, %c0_6] : memref<2x4x256xf32, #tpu.memory_space<vmem>>, vector<2x4x256xf32>
    %cst_7 = arith.constant 2.000000e+00 : f32
    %13 = vector.broadcast %cst_7 : f32 to vector<2x1x256xf32>
    %14 = arith.mulf %13, %11 : vector<2x1x256xf32>
    %15 = vector.broadcast %14 : vector<2x1x256xf32> to vector<2x4x256xf32>
    %16 = arith.mulf %12, %15 : vector<2x4x256xf32>
    %c0_8 = arith.constant 0 : index
    %c0_9 = arith.constant 0 : index
    %c0_10 = arith.constant 0 : index
    %17 = vector.load %arg3[%c0_8, %c0_9, %c0_10] : memref<2x4x256xf32, #tpu.memory_space<vmem>>, vector<2x4x256xf32>
    tpu.vector_store %arg3[%c0_8, %c0_9, %c0_10], %16 {strides = array<i32>} : memref<2x4x256xf32, #tpu.memory_space<vmem>>, vector<2x4x256xf32>,
    return
  }
  func.func @transform_0(%arg0: i32, %arg1: i32) -> (i32, i32, i32) {
    %c0_i32 = arith.constant 0 : i32
    %c0_i32_0 = arith.constant 0 : i32
    return %arg0, %c0_i32, %arg1 : i32, i32, i32
  }
  func.func @transform_1(%arg0: i32, %arg1: i32) -> (i32, i32, i32) {
    %c0_i32 = arith.constant 0 : i32
    %c0_i32_0 = arith.constant 0 : i32
    return %arg0, %c0_i32, %arg1 : i32, i32, i32
  }
}

</mosaic_0001>

<bundles_post_ra>
// kernel: tpu_custom_call.1
= control target key start
LH: loop header
LB: loop body
LE: loop exit
PB: predicated region body
PF: predicated region fallthrough
CT: control target
= control target key end

     0   :  { %6 = vsyncpa [#allocation3], 0  ;;  %s291_s0 = inlined_call_operand.hbm [shape: f32[2,4,256], index: 0, kind: input, shape index: {}]   ;;  %s292_s1 = inlined_call_operand.hbm [shape: f32[2,4,256], index: 1, kind: output, shape index: {}]  }
   0x1   :  { %7 = vsyncpa [#allocation4], 0  ;;  %s12_s8 = sshll.u32 %s291_s0, 4  ;;  %s248_s9 = smov [#allocation2]   ;;  %s13_s8 = int_to_ptr.hbm [resolvable:$true] %s12_s8 }
   0x2   :  { %s14_s10 = sshll.u32 %s248_s9, 4  ;;  %s249_s11 = smov 128   ;;  %s15_s10 = int_to_ptr.vmem [resolvable:$true] %s14_s10 }
   0x3   :  { %s250_s12 = smov 8  }
   0x4   :  { %20 = dma.hbm_to_vmem [thread:$0]  %s13_s8, 256, %s15_s10, [#allocation3], %s249_s11, %s249_s11, %s250_s12  }
   0x5   :  { %244 = dma.done.wait [#allocation3], 256  }
   0x6   :  { %245 = vsyncadd [#allocation3], 4294967040  ;;  %v268_v0 = vld [vmem:[#allocation2] sm:$0xff]  ;;  %v270_v1 = vld [vmem:[#allocation2 + $0x8] sm:$0xff]  ;;  %vm42_vm0 = vcmask 1043456   ;;  %s251_s0 = smov [#allocation5]  }
   0x7   :  { %v27_v2 = vmul.f32 %v268_v0, %v268_v0  ;;  %v28_v3 = vmul.f32 %v270_v1, %v270_v1  ;;  %s161_s13 = sshll.u32 %s251_s0, 4  ;;  %s163_s16 = sshll.u32 %s292_s1, 4  ;;  %s162_s13 = int_to_ptr.vmem [resolvable:$true] %s161_s13  ;;  %s164_s16 = int_to_ptr.hbm [resolvable:$true] %s163_s16 }
   0x9   :  { %31 = vst [vmem:[#allocation1] ss:$2 sm:$0xff] %v27_v2 }
   0xa   :  { %35 = vst [vmem:[#allocation1 + $0x10] ss:$2 sm:$0xff] %v28_v3 }
  0x10   :  { %v32_v4 = vld.sshfl [vmem:[#allocation1] sm:$0xff pattern:$0x75316420]  ;;  %v33_v5 = vld.sshfl [vmem:[#allocation1 + $0x8] sm:$0xff pattern:$0x75316420] }
  0x11   :  { %v36_v6 = vld.sshfl [vmem:[#allocation1 + $0x10] sm:$0xff pattern:$0x75316420]  ;;  %v37_v7 = vld.sshfl [vmem:[#allocation1 + $0x18] sm:$0xff pattern:$0x75316420] }
  0x12   :  { %v43_v8 = vsel %vm42_vm0, %v32_v4, 0.0  ;;  %v50_v9 = vsel %vm42_vm0, %v33_v5, 0.0  ;;  %v57_v10 = vsel %vm42_vm0, %v36_v6, 0.0  ;;  %v64_v11 = vsel %vm42_vm0, %v37_v7, 0.0 }
  0x13   :  { %v44_v12 = vrot.slane %v43_v8, 4  ;;  %v51_v13 = vrot.slane %v50_v9, 4  ;;  %v58_v14 = vrot.slane %v57_v10, 4  ;;  %v65_v15 = vrot.slane %v64_v11, 4 }
  0x15   :  { %v45_v16 = vadd.f32 %v44_v12, %v43_v8  ;;  %v52_v17 = vadd.f32 %v51_v13, %v50_v9  ;;  %v59_v18 = vadd.f32 %v58_v14, %v57_v10  ;;  %v66_v19 = vadd.f32 %v65_v15, %v64_v11 }
  0x17   :  { %v46_v20 = vrot.slane %v45_v16, 2  ;;  %v53_v21 = vrot.slane %v52_v17, 2  ;;  %v60_v22 = vrot.slane %v59_v18, 2  ;;  %v67_v23 = vrot.slane %v66_v19, 2 }
  0x19   :  { %v47_v24 = vadd.f32 %v46_v20, %v45_v16  ;;  %v54_v25 = vadd.f32 %v53_v21, %v52_v17  ;;  %v61_v26 = vadd.f32 %v60_v22, %v59_v18  ;;  %v68_v27 = vadd.f32 %v67_v23, %v66_v19 }
  0x1b   :  { %v48_v28 = vrot.slane %v47_v24, 1  ;;  %v55_v29 = vrot.slane %v54_v25, 1  ;;  %v62_v30 = vrot.slane %v61_v26, 1  ;;  %v69_v31 = vrot.slane %v68_v27, 1 }
  0x1d   :  { %v49_v32 = vadd.f32 %v48_v28, %v47_v24  ;;  %v56_v33 = vadd.f32 %v55_v29, %v54_v25  ;;  %v63_v34 = vadd.f32 %v62_v30, %v61_v26  ;;  %v70_v35 = vadd.f32 %v69_v31, %v68_v27 }
  0x1f   :  { %180 = vrsqrt.f32 %v49_v32  ;;  %vm78_vm1 = vcmp.eq.f32.partialorder %v49_v32, inf  ;;  %vm80_vm2 = vcmp.eq.f32.partialorder %v49_v32, 0.0  ;;  %v81_v56 = vand.u32 2147483648, %v49_v32 }
  0x20   :  { %182 = vrsqrt.f32 %v56_v33  ;;  %vm90_vm3 = vcmp.eq.f32.partialorder %v56_v33, inf  ;;  %vm92_vm4 = vcmp.eq.f32.partialorder %v56_v33, 0.0  ;;  %v93_v62 = vand.u32 2147483648, %v56_v33 }
  0x21   :  { %184 = vrsqrt.f32 %v63_v34  ;;  %vm102_vm5 = vcmp.eq.f32.partialorder %v63_v34, inf  ;;  %vm104_vm6 = vcmp.eq.f32.partialorder %v63_v34, 0.0  ;;  %v105_v4 = vand.u32 2147483648, %v63_v34 }
  0x22   :  { %186 = vrsqrt.f32 %v70_v35  ;;  %vm114_vm7 = vcmp.eq.f32.partialorder %v70_v35, inf  ;;  %v117_v11 = vand.u32 2147483648, %v70_v35  ;;  %vm116_vm8 = vcmp.eq.f32.partialorder %v70_v35, 0.0 }
  0x25   :  { %v181_v36 = vpop.eup %180 }
  0x26   :  { %v183_v37 = vpop.eup %182  ;;  %v72_v38 = vmul.f32 %v181_v36, %v49_v32 }
  0x27   :  { %v185_v39 = vpop.eup %184  ;;  %v84_v40 = vmul.f32 %v183_v37, %v56_v33 }
  0x28   :  { %v187_v41 = vpop.eup %186  ;;  %v73_v42 = vmul.f32 %v181_v36, %v72_v38  ;;  %v96_v43 = vmul.f32 %v185_v39, %v63_v34 }
  0x29   :  { %v85_v44 = vmul.f32 %v183_v37, %v84_v40  ;;  %v108_v45 = vmul.f32 %v187_v41, %v70_v35 }
  0x2a   :  { %v74_v46 = vmul.f32 0.5, %v73_v42  ;;  %v97_v47 = vmul.f32 %v185_v39, %v96_v43 }
  0x2b   :  { %v86_v48 = vmul.f32 0.5, %v85_v44  ;;  %v109_v49 = vmul.f32 %v187_v41, %v108_v45 }
  0x2c   :  { %v75_v50 = vsub.f32 1.5, %v74_v46  ;;  %v98_v51 = vmul.f32 0.5, %v97_v47 }
  0x2d   :  { %v87_v52 = vsub.f32 1.5, %v86_v48  ;;  %v110_v53 = vmul.f32 0.5, %v109_v49 }
  0x2e   :  { %v76_v54 = vmul.f32 %v181_v36, %v75_v50  ;;  %v99_v55 = vsub.f32 1.5, %v98_v51 }
  0x2f   :  { %v88_v57 = vmul.f32 %v183_v37, %v87_v52  ;;  %v111_v58 = vsub.f32 1.5, %v110_v53 }
  0x30   :  { %v77_v59 = vmul.f32 %v76_v54, %v49_v32  ;;  %v100_v60 = vmul.f32 %v185_v39, %v99_v55 }
  0x31   :  { %v89_v61 = vmul.f32 %v88_v57, %v56_v33  ;;  %v112_v63 = vmul.f32 %v187_v41, %v111_v58 }
  0x32   :  { %v79_v2 = vsel %vm78_vm1, %v49_v32, %v77_v59  ;;  %v101_v3 = vmul.f32 %v100_v60, %v63_v34 }
  0x33   :  { %v82_v5 = vsel %vm80_vm2, %v81_v56, %v79_v2  ;;  %v91_v6 = vsel %vm90_vm3, %v56_v33, %v89_v61  ;;  %v113_v7 = vmul.f32 %v112_v63, %v70_v35 }
  0x34   :  { %v94_v8 = vsel %vm92_vm4, %v93_v62, %v91_v6  ;;  %v119_v9 = vmax.f32 %v82_v5, 0.0001  ;;  %v103_v10 = vsel %vm102_vm5, %v63_v34, %v101_v3 }
  0x35   :  { %v120_v12 = vmax.f32 %v94_v8, 0.0001  ;;  %v106_v13 = vsel %vm104_vm6, %v105_v4, %v103_v10  ;;  %v115_v14 = vsel %vm114_vm7, %v70_v35, %v113_v7 }
  0x36   :  { %188 = vrcp.f32 %v119_v9  ;;  %v118_v15 = vsel %vm116_vm8, %v117_v11, %v115_v14  ;;  %v121_v16 = vmax.f32 %v106_v13, 0.0001 }
  0x37   :  { %190 = vrcp.f32 %v120_v12  ;;  %v122_v17 = vmax.f32 %v118_v15, 0.0001 }
  0x38   :  { %192 = vrcp.f32 %v121_v16 }
  0x39   :  { %194 = vrcp.f32 %v122_v17 }
  0x3c   :  { %v189_v18 = vpop.eup %188 }
  0x3d   :  { %v191_v19 = vpop.eup %190  ;;  %v127_v20 = vmul.f32 %v189_v18, %v119_v9 }
  0x3e   :  { %v193_v21 = vpop.eup %192  ;;  %v128_v22 = vmul.f32 %v191_v19, %v120_v12 }
  0x3f   :  { %v195_v23 = vpop.eup %194  ;;  %v131_v24 = vsub.f32 2.0, %v127_v20  ;;  %v129_v25 = vmul.f32 %v193_v21, %v121_v16 }
  0x40   :  { %v132_v26 = vsub.f32 2.0, %v128_v22  ;;  %v130_v27 = vmul.f32 %v195_v23, %v122_v17 }
  0x41   :  { %v133_v28 = vsub.f32 2.0, %v129_v25  ;;  %v135_v29 = vmul.f32 %v189_v18, %v131_v24 }
  0x42   :  { %v136_v30 = vmul.f32 %v191_v19, %v132_v26  ;;  %v134_v31 = vsub.f32 2.0, %v130_v27 }
  0x43   :  { %v137_v33 = vmul.f32 %v193_v21, %v133_v28  ;;  %v139_v35 = vmul.f32 2.0, %v135_v29 }
  0x44   :  { %v140_v32 = vmul.f32 2.0, %v136_v30  ;;  %v138_v34 = vmul.f32 %v195_v23, %v134_v31 }
  0x45   :  { %v141_v39 = vmul.f32 2.0, %v137_v33 }
  0x46   :  { %v147_v36 = vrot.slane %v140_v32, 4  ;;  %v142_v37 = vmul.f32 2.0, %v138_v34 }
  0x48   :  { %v149_v38 = vsel %vm42_vm0, %v139_v35, %v147_v36  ;;  %v148_v40 = vrot.slane %v142_v37, 4 }
  0x49   :  { %v153_v41 = vmul.f32 %v149_v38, %v268_v0 }
  0x4a   :  { %v150_v42 = vsel %vm42_vm0, %v141_v39, %v148_v40 }
  0x4b   :  { %155 = vst [vmem:[#allocation5] sm:$0xff] %v153_v41  ;;  %v154_v43 = vmul.f32 %v150_v42, %v270_v1 }
  0x4d   :  { %156 = vst [vmem:[#allocation5 + $0x8] sm:$0xff] %v154_v43 }
  0x4e   :  { %169 = dma.vmem_to_hbm [thread:$0]  %s162_s13, 256, %s164_s16, [#allocation4], %s249_s11, %s249_s11, %s250_s12  }
  0x4f   :  { %246 = dma.done.wait [#allocation4], 256  }
  0x50   :  { %247 = vsyncadd [#allocation4], 4294967040 }
  0x51   :  { %174 = vsyncpa [#allocation3], 1 }
  0x52   :  { %175 = vsyncpa [#allocation4], 1 }

</bundles_post_ra>
